<compile_context>
chip_gen: v6e
topology: v6e:2x2x1
jax: 0.10.0
libtpu: 0.0.40
codegen_flags: <defaults>
</compile_context>

<pallas_src>
import math

import jax
import jax.numpy as jnp
from jax.experimental import pallas as pl
from jax.experimental.pallas import tpu as pltpu

L1_SIZE = 128
L2_SIZE = 128
_LANES = 128


def _round_up(n, m):
    return ((n + m - 1) // m) * m


def _cdiv(a, b):
    return (a + b - 1) // b


def _choose_tiling(batch, tm_cap):
    """Pick (tile_m, n_tiles).

    tile_m is a multiple of 128 (so the output block can be stored
    lane-dense); tiles are as large as possible (capped at tm_cap) to
    amortize per-grid-step overhead, and when the batch is big enough we
    target an even tile count so the "parallel" batch axis can be split
    across both v7x TensorCores (irrelevant on v5e/v6e).
    """
    tm_cap = max(_LANES, _round_up(tm_cap, _LANES))
    rows = _round_up(max(batch, 1), _LANES)
    if rows <= tm_cap:
        if rows >= 2048 and batch > rows // 2:
            tile_m = _round_up(rows // 2, _LANES)      # 2 tiles -> megacore
        else:
            tile_m = rows                              # single large tile
    else:
        n_target = max(2, 2 * _cdiv(rows, 2 * tm_cap))  # even tile count
        tile_m = _round_up(_cdiv(rows, n_target), _LANES)
    n_tiles = _cdiv(batch, tile_m)                     # last tile always overlaps B
    return tile_m, n_tiles


def _critic_kernel(xu_ref, w1_ref, b1_ref, w2a_ref, w2b_ref, b2_ref,
                   w3_ref, b3_ref, o_ref):
    xu = xu_ref[...]                                           # (TM, S+A)

    # xs = relu(l1(x / scale)); 1/scale folded into W1, zero rows for the u part.
    h1 = jnp.dot(xu, w1_ref[...], preferred_element_type=jnp.float32)
    xs = jnp.maximum(h1 + b1_ref[...], 0.0)

    # relu(l2(cat([xs, u])))  ==  relu(xs @ W2a + [x|u] @ W2b_padded + b2)
    h2 = jnp.dot(xs, w2a_ref[...], preferred_element_type=jnp.float32)
    h2 = h2 + jnp.dot(xu, w2b_ref[...], preferred_element_type=jnp.float32)
    h2 = jnp.maximum(h2 + b2_ref[...], 0.0)

    # l3 (N=1): VPU multiply + XLU lane reduction (not a 1-column MXU matmul),
    # then a lane-dense store: (TM,) -> (1, TM/128, 128) unmasked vregs.
    q = jnp.sum(h2 * w3_ref[...], axis=-1) + b3_ref[0]         # (TM,)
    o_ref[...] = q.reshape(o_ref.shape)


def critic_forward(x, u, kparams, *, tm_cap=2048):
    """Critic forward pass as a single gridded Pallas kernel.

    `kparams` must come from `prepare_kernel_params` (scale folded into W1,
    W1 / W2b zero-padded to act on the packed [x|u] operand, W3 as a (1,128)
    row, b3 as a (1,) SMEM scalar).
    """
    B, state_dim = x.shape
    action_dim = u.shape[1]
    sa = state_dim + action_dim

    tile_m, n_tiles = _choose_tiling(B, tm_cap)
    sub = tile_m // _LANES
    rows_cover = n_tiles * tile_m

    # Pack [x | u] into one operand -> a single per-step input DMA.  Rows are
    # padded only up to the grid coverage (< tile_m extra rows, often zero);
    # the concat+pad fuse into one small copy on the XLA side.
    xu = jnp.concatenate([x.astype(jnp.float32), u.astype(jnp.float32)], axis=1)
    if rows_cover != B:
        xu = jnp.pad(xu, ((0, rows_cover - B), (0, 0)))

    weight_elems = sum(int(kparams[k].size)
                       for k in ("w1p", "b1", "w2a", "w2bp", "b2", "w3_row", "b3"))
    cost = pl.CostEstimate(
        flops=2 * rows_cover * (2 * sa * L1_SIZE + L1_SIZE * L2_SIZE + L2_SIZE),
        transcendentals=0,
        bytes_accessed=4 * (rows_cover * (sa + 1) + weight_elems))

    def resident(arr):
        r, c = arr.shape
        # Same block every grid step -> DMA'd once, stays resident in VMEM.
        return pl.BlockSpec((r, c), lambda i: (0, 0))

    out = pl.pallas_call(
        _critic_kernel,
        out_shape=jax.ShapeDtypeStruct((n_tiles, sub, _LANES), jnp.float32),
        grid=(n_tiles,),
        in_specs=[
            pl.BlockSpec((tile_m, sa), lambda i: (i, 0)),        # xu (batch-tiled)
            resident(kparams["w1p"]),                            # (S+A, 128)
            resident(kparams["b1"]),                             # (1, 128)
            resident(kparams["w2a"]),                            # (128, 128)
            resident(kparams["w2bp"]),                           # (S+A, 128)
            resident(kparams["b2"]),                             # (1, 128)
            resident(kparams["w3_row"]),                         # (1, 128)
            pl.BlockSpec(memory_space=pltpu.MemorySpace.SMEM),   # b3 scalar
        ],
        out_specs=pl.BlockSpec((1, sub, _LANES), lambda i: (i, 0, 0)),
        compiler_params=pltpu.CompilerParams(
            dimension_semantics=("parallel",),       # megacore split on v7x
            vmem_limit_bytes=32 * 1024 * 1024),      # headroom on v5e for big tiles
        cost_estimate=cost,
    )(xu, kparams["w1p"], kparams["b1"], kparams["w2a"], kparams["w2bp"],
      kparams["b2"], kparams["w3_row"], kparams["b3"])

    # Lane-dense output slab -> (B, 1), dropping the (few) padded rows.
    return out.reshape(rows_cover)[:B].reshape(B, 1)


def init_critic_params(key, state_dim, action_dim,
                       l1_size=L1_SIZE, l2_size=L2_SIZE):
    """Deterministic init mirroring the PyTorch module's reset_parameters()."""
    ks = jax.random.split(key, 6)

    def uniform(k, shape, lim):
        return jax.random.uniform(k, shape, jnp.float32, -lim, lim)

    # l1: fan_in = state_dim
    lim1 = 1.0 / math.sqrt(state_dim)
    w1 = uniform(ks[0], (state_dim, l1_size), lim1)            # (in, out)
    b1 = uniform(ks[1], (1, l1_size), lim1)

    # l2: fan_in = l1_size + action_dim ; split weight for the fused concat
    fan2 = l1_size + action_dim
    lim2 = 1.0 / math.sqrt(fan2)
    w2 = uniform(ks[2], (fan2, l2_size), lim2)
    w2a = w2[:l1_size, :]                                      # acts on xs
    w2b = w2[l1_size:, :]                                      # acts on u
    b2 = uniform(ks[3], (1, l2_size), lim2)

    # l3: weight uniform(-0.003, 0.003), bias default uniform(+-1/sqrt(fan_in))
    w3 = uniform(ks[4], (l2_size, 1), 0.003)
    b3 = uniform(ks[5], (1, 1), 1.0 / math.sqrt(l2_size))

    return dict(w1=w1, b1=b1, w2a=w2a, w2b=w2b, b2=b2, w3=w3, b3=b3)


def prepare_kernel_params(params, scale):
    """One-time transforms: fold 1/scale into W1, zero-pad W1 / W2b so both
    act directly on the packed [x|u] operand, lay W3 out lane-dense, keep b3
    as a 1-D SMEM scalar."""
    w1 = params["w1"] * (1.0 / float(scale))           # (S, 128), scale folded
    w2a = params["w2a"]                                # (128, 128)
    w2b = params["w2b"]                                # (A, 128)
    state_dim = w1.shape[0]
    action_dim = w2b.shape[0]
    zeros_a = jnp.zeros((action_dim, w1.shape[1]), w1.dtype)
    zeros_s = jnp.zeros((state_dim, w2b.shape[1]), w2b.dtype)
    return dict(
        w1p=jnp.concatenate([w1, zeros_a], axis=0),    # [x|u] @ w1p == (x/scale) @ w1
        b1=params["b1"],
        w2a=w2a,
        w2bp=jnp.concatenate([zeros_s, w2b], axis=0),  # [x|u] @ w2bp == u @ w2b
        b2=params["b2"],
        w3_row=params["w3"].T,                         # (1, 128)
        b3=params["b3"].reshape(1),                    # (1,) scalar in SMEM
    )


def critic_reference(x, u, params, scale):
    """Pure-JAX reference for validation (matches the PyTorch forward)."""
    x = x / scale
    xs = jax.nn.relu(x @ params["w1"] + params["b1"])
    cat = jnp.concatenate([xs, u], axis=1)
    w2 = jnp.concatenate([params["w2a"], params["w2b"]], axis=0)
    h2 = jax.nn.relu(cat @ w2 + params["b2"])
    return h2 @ params["w3"] + params["b3"]


if __name__ == "__main__":
    state_dim = 16
    action_dim = 4
    scale = 10.0

    key = jax.random.PRNGKey(0)
    kx, ku, kp, kx2, ku2 = jax.random.split(key, 5)

    params = init_critic_params(kp, state_dim, action_dim)
    kparams = prepare_kernel_params(params, scale)

    # Small batch: single tile, single grid step.
    batch = 8
    x = jax.random.normal(kx, (batch, state_dim), jnp.float32)
    u = jax.random.normal(ku, (batch, action_dim), jnp.float32)
    out = jax.block_until_ready(critic_forward(x, u, kparams))
    ref = critic_reference(x, u, params, scale)
    assert out.shape == (batch, 1)
    assert jnp.allclose(out, ref, atol=1e-5, rtol=1e-4), "mismatch vs reference (B=8)"

    # Larger non-multiple batch with a small tile cap to exercise the gridded
    # path (multiple tiles, resident weights, lane-dense multi-block output).
    batch2 = 300
    x2 = jax.random.normal(kx2, (batch2, state_dim), jnp.float32)
    u2 = jax.random.normal(ku2, (batch2, action_dim), jnp.float32)
    out2 = jax.block_until_ready(critic_forward(x2, u2, kparams, tm_cap=128))
    ref2 = critic_reference(x2, u2, params, scale)
    assert out2.shape == (batch2, 1)
    assert jnp.allclose(out2, ref2, atol=1e-5, rtol=1e-4), "mismatch vs reference (B=300)"

    print("KERNEL_OK")
</pallas_src>

<mosaic_0001>
module attributes {stable_mosaic.version = 11 : i64} {
  func.func @_critic_kernel(%arg0: i32, %arg1: memref<128x20xf32, #tpu.memory_space<vmem>>, %arg2: memref<20x128xf32, #tpu.memory_space<vmem>>, %arg3: memref<1x128xf32, #tpu.memory_space<vmem>>, %arg4: memref<128x128xf32, #tpu.memory_space<vmem>>, %arg5: memref<20x128xf32, #tpu.memory_space<vmem>>, %arg6: memref<1x128xf32, #tpu.memory_space<vmem>>, %arg7: memref<1x128xf32, #tpu.memory_space<vmem>>, %arg8: memref<1xf32, #tpu.memory_space<smem>>, %arg9: memref<1x1x128xf32, #tpu.memory_space<vmem>>) attributes {dimension_semantics = [#tpu.dimension_semantics<parallel>], iteration_bounds = array<i64: 1>, scalar_prefetch = 0 : i64, scratch_operands = 0 : i64, tpu.core_type = #tpu.core_type<tc>, window_params = [{transform_indices = @transform_0, window_bounds = array<i64: 128, 20>}, {pipeline_mode = #tpu.pipeline_mode<synchronous>, transform_indices = @transform_1, window_bounds = array<i64: 20, 128>}, {pipeline_mode = #tpu.pipeline_mode<synchronous>, transform_indices = @transform_2, window_bounds = array<i64: 1, 128>}, {pipeline_mode = #tpu.pipeline_mode<synchronous>, transform_indices = @transform_3, window_bounds = array<i64: 128, 128>}, {pipeline_mode = #tpu.pipeline_mode<synchronous>, transform_indices = @transform_4, window_bounds = array<i64: 20, 128>}, {pipeline_mode = #tpu.pipeline_mode<synchronous>, transform_indices = @transform_5, window_bounds = array<i64: 1, 128>}, {pipeline_mode = #tpu.pipeline_mode<synchronous>, transform_indices = @transform_6, window_bounds = array<i64: 1, 128>}, {transform_indices = @transform_7, window_bounds = array<i64: 1>}, {transform_indices = @transform_8, window_bounds = array<i64: 1, 1, 128>}]} {
    %c0 = arith.constant 0 : index
    %c0_0 = arith.constant 0 : index
    %0 = vector.load %arg1[%c0, %c0_0] : memref<128x20xf32, #tpu.memory_space<vmem>>, vector<128x20xf32>
    %c0_1 = arith.constant 0 : index
    %c0_2 = arith.constant 0 : index
    %1 = vector.load %arg2[%c0_1, %c0_2] : memref<20x128xf32, #tpu.memory_space<vmem>>, vector<20x128xf32>
    %cst = arith.constant dense<0.000000e+00> : vector<128x128xf32>
    %2 = tpu.matmul %0, %1, %cst {dimension_numbers = #tpu.dot_dimension_numbers<[1], [0], [0], [1], [0, 0, 1, 1], [], []>} : vector<128x20xf32>, vector<20x128xf32>, vector<128x128xf32> -> vector<128x128xf32>
    %c0_3 = arith.constant 0 : index
    %c0_4 = arith.constant 0 : index
    %3 = vector.load %arg3[%c0_3, %c0_4] : memref<1x128xf32, #tpu.memory_space<vmem>>, vector<1x128xf32>
    %4 = vector.broadcast %3 : vector<1x128xf32> to vector<128x128xf32>
    %5 = arith.addf %2, %4 : vector<128x128xf32>
    %cst_5 = arith.constant 0.000000e+00 : f32
    %6 = vector.broadcast %cst_5 : f32 to vector<128x128xf32>
    %7 = arith.maximumf %5, %6 : vector<128x128xf32>
    %c0_6 = arith.constant 0 : index
    %c0_7 = arith.constant 0 : index
    %8 = vector.load %arg4[%c0_6, %c0_7] : memref<128x128xf32, #tpu.memory_space<vmem>>, vector<128x128xf32>
    %cst_8 = arith.constant dense<0.000000e+00> : vector<128x128xf32>
    %9 = tpu.matmul %7, %8, %cst_8 {dimension_numbers = #tpu.dot_dimension_numbers<[1], [0], [0], [1], [0, 0, 1, 1], [], []>} : vector<128x128xf32>, vector<128x128xf32>, vector<128x128xf32> -> vector<128x128xf32>
    %c0_9 = arith.constant 0 : index
    %c0_10 = arith.constant 0 : index
    %10 = vector.load %arg5[%c0_9, %c0_10] : memref<20x128xf32, #tpu.memory_space<vmem>>, vector<20x128xf32>
    %cst_11 = arith.constant dense<0.000000e+00> : vector<128x128xf32>
    %11 = tpu.matmul %0, %10, %cst_11 {dimension_numbers = #tpu.dot_dimension_numbers<[1], [0], [0], [1], [0, 0, 1, 1], [], []>} : vector<128x20xf32>, vector<20x128xf32>, vector<128x128xf32> -> vector<128x128xf32>
    %12 = arith.addf %9, %11 : vector<128x128xf32>
    %c0_12 = arith.constant 0 : index
    %c0_13 = arith.constant 0 : index
    %13 = vector.load %arg6[%c0_12, %c0_13] : memref<1x128xf32, #tpu.memory_space<vmem>>, vector<1x128xf32>
    %14 = vector.broadcast %13 : vector<1x128xf32> to vector<128x128xf32>
    %15 = arith.addf %12, %14 : vector<128x128xf32>
    %cst_14 = arith.constant 0.000000e+00 : f32
    %16 = vector.broadcast %cst_14 : f32 to vector<128x128xf32>
    %17 = arith.maximumf %15, %16 : vector<128x128xf32>
    %c0_15 = arith.constant 0 : index
    %c0_16 = arith.constant 0 : index
    %18 = vector.load %arg7[%c0_15, %c0_16] : memref<1x128xf32, #tpu.memory_space<vmem>>, vector<1x128xf32>
    %19 = vector.broadcast %18 : vector<1x128xf32> to vector<128x128xf32>
    %20 = arith.mulf %17, %19 : vector<128x128xf32>
    %cst_17 = arith.constant dense<0.000000e+00> : vector<128xf32>
    %21 = vector.multi_reduction <add>, %20, %cst_17 [1] : vector<128x128xf32> to vector<128xf32>
    %c0_18 = arith.constant 0 : index
    %22 = memref.load %arg8[%c0_18] : memref<1xf32, #tpu.memory_space<smem>>
    %23 = vector.broadcast %22 : f32 to vector<128xf32>
    %24 = arith.addf %21, %23 : vector<128xf32>
    %25 = vector.shape_cast %24 : vector<128xf32> to vector<1x1x128xf32>
    %c0_19 = arith.constant 0 : index
    %c0_20 = arith.constant 0 : index
    %c0_21 = arith.constant 0 : index
    %26 = vector.load %arg9[%c0_19, %c0_20, %c0_21] : memref<1x1x128xf32, #tpu.memory_space<vmem>>, vector<1x1x128xf32>
    tpu.vector_store %arg9[%c0_19, %c0_20, %c0_21], %25 {strides = array<i32>} : memref<1x1x128xf32, #tpu.memory_space<vmem>>, vector<1x1x128xf32>,
    return
  }
  func.func @transform_0(%arg0: i32) -> (i32, i32) {
    %c0_i32 = arith.constant 0 : i32
    %c0_i32_0 = arith.constant 0 : i32
    return %arg0, %c0_i32 : i32, i32
  }
  func.func @transform_1(%arg0: i32) -> (i32, i32) {
    %c0_i32 = arith.constant 0 : i32
    %c0_i32_0 = arith.constant 0 : i32
    %c0_i32_1 = arith.constant 0 : i32
    return %c0_i32, %c0_i32_0 : i32, i32
  }
  func.func @transform_2(%arg0: i32) -> (i32, i32) {
    %c0_i32 = arith.constant 0 : i32
    %c0_i32_0 = arith.constant 0 : i32
    %c0_i32_1 = arith.constant 0 : i32
    return %c0_i32, %c0_i32_0 : i32, i32
  }
  func.func @transform_3(%arg0: i32) -> (i32, i32) {
    %c0_i32 = arith.constant 0 : i32
    %c0_i32_0 = arith.constant 0 : i32
    %c0_i32_1 = arith.constant 0 : i32
    return %c0_i32, %c0_i32_0 : i32, i32
  }
  func.func @transform_4(%arg0: i32) -> (i32, i32) {
    %c0_i32 = arith.constant 0 : i32
    %c0_i32_0 = arith.constant 0 : i32
    %c0_i32_1 = arith.constant 0 : i32
    return %c0_i32, %c0_i32_0 : i32, i32
  }
  func.func @transform_5(%arg0: i32) -> (i32, i32) {
    %c0_i32 = arith.constant 0 : i32
    %c0_i32_0 = arith.constant 0 : i32
    %c0_i32_1 = arith.constant 0 : i32
    return %c0_i32, %c0_i32_0 : i32, i32
  }
  func.func @transform_6(%arg0: i32) -> (i32, i32) {
    %c0_i32 = arith.constant 0 : i32
    %c0_i32_0 = arith.constant 0 : i32
    %c0_i32_1 = arith.constant 0 : i32
    return %c0_i32, %c0_i32_0 : i32, i32
  }
  func.func @transform_7(%arg0: i32) -> i32 {
    %c0_i32 = arith.constant 0 : i32
    %c0_i32_0 = arith.constant 0 : i32
    return %c0_i32 : i32
  }
  func.func @transform_8(%arg0: i32) -> (i32, i32, i32) {
    %c0_i32 = arith.constant 0 : i32
    %c0_i32_0 = arith.constant 0 : i32
    %c0_i32_1 = arith.constant 0 : i32
    return %arg0, %c0_i32, %c0_i32_0 : i32, i32, i32
  }
}

</mosaic_0001>

<bundles_post_ra>
// kernel: tpu_custom_call.1
= control target key start
LH: loop header
LB: loop body
LE: loop exit
PB: predicated region body
PF: predicated region fallthrough
CT: control target
= control target key end

     0   :  { %14 = vsyncpa [#allocation4], 0  ;;  %s1509_s0 = inlined_call_operand.vmem [shape: f32[128,20], index: 0, kind: input, shape index: {}]   ;;  %s1510_s1 = inlined_call_operand.vmem [shape: f32[20,128], index: 1, kind: input, shape index: {}]   ;;  %s1511_s2 = inlined_call_operand.vmem [shape: f32[1,128], index: 2, kind: input, shape index: {}]   ;;  %s1512_s3 = inlined_call_operand.vmem [shape: f32[128,128], index: 3, kind: input, shape index: {}]   ;;  %s1513_s4 = inlined_call_operand.hbm [shape: f32[20,128], index: 4, kind: input, shape index: {}]   ;;  %s1514_s5 = inlined_call_operand.vmem [shape: f32[1,128], index: 5, kind: input, shape index: {}]   ;;  %s1515_s6 = inlined_call_operand.vmem [shape: f32[1,128], index: 6, kind: input, shape index: {}]   ;;  %s1516_s7 = inlined_call_operand.<no memory space> [shape: f32[1], index: 7, kind: input, shape index: {}]   ;;  %s1517_s8 = inlined_call_operand.hbm [shape: f32[1,1,128], index: 8, kind: output, shape index: {}]  }
   0x1   :  { %15 = vsyncpa [#allocation5], 0  ;;  %s1156_s27 = smov [#allocation3]  }
   0x2   :  { %s29_s28 = sshll.u32 %s1156_s27, 4  ;;  %s30_s28 = int_to_ptr.vmem [resolvable:$true] %s29_s28 }
   0x3   :  { %s1120_s29 = scalar_lea.vmem %s30_s28, 384  ;;  %p1125_p1 = scmp.lt.s32.totalorder %s30_s28, %s30_s28 }
   0x4   :  { %p1121_p0 = scmp.ne.s32.totalorder %s30_s28, %s1120_s29  ;;  %p1126_p2 = scmp.lt.s32.totalorder %s1120_s29, %s1120_s29 }
   0x6   :  { %p1127_p3 = por %p1126_p2, %p1125_p1 }
   0x8   :  { %p1128_p4 = pnand %p1127_p3, %p1121_p0 }
   0xa   :  { %1131 = shalt.err (!%p1128_p4)
}
   0xb   :  { %s1157_s30 = smov 128   ;;  %s1158_s9 = smov 8  }
   0xc   :  { %35 = dma.hbm_to_vmem [thread:$0]  %s1513_s4, 384, %s30_s28, [#allocation4], %s1157_s30, %s1157_s30, %s1158_s9  }
   0xd   :  { %1152 = dma.done.wait [#allocation4], 384  }
   0xe   :  { %1153 = vsyncadd [#allocation4], 4294966912  ;;  %vm120_vm0 = vcmask 1043456   ;;  %vm71_vm1 = vcmask 162816   ;;  %v63_v0 = vld [vmem:[%s1510_s1 + $0x10] sm:$0xf] }
   0xf   :  { %v62_v1 = vld [vmem:[%s1510_s1 + $0x8] sm:$0xff]  ;;  %960 = vmatprep.subr.msk.mxu0 %vm120_vm0, %v63_v0  ;;  %v45_v2 = vld [vmem:[%s1509_s0] sm:$0xff]  ;;  %v1230_v5 = vld [vmem:[%s1509_s0 + $0x10] sm:$0xff]  ;;  %vm736_vm2 = vcmask 130112   ;;  %vm743_vm3 = vcmask 195712   ;;  %vm750_vm4 = vcmask 261312  }
  0x10   :  { %961 = vmatpush3.msk.msra.mxu0 %vm120_vm0, %v63_v0  ;;  %v61_v3 = vld [vmem:[%s1510_s1] sm:$0xff]  ;;  %966 = vmatprep.mubr.msk.f32.mxu0 %vm71_vm1, %v45_v2  ;;  %v46_v4 = vld [vmem:[%s1509_s0 + $0x8] sm:$0xff]  ;;  %v300_v6 = vld [vmem:[%s1512_s3 + $0x78] sm:$0xff]  ;;  %vm757_vm5 = vcmask 326912   ;;  %vm764_vm6 = vcmask 392512   ;;  %vm771_vm7 = vcmask 458112  }
  0x11   :  { %962 = vmatprep.subr.mxu0 %v62_v1  ;;  %996 = vmatprep.mubr.msk.f32.mxu1 %vm71_vm1, %v45_v2  ;;  %v1238_v7 = vld [vmem:[%s1512_s3 + $0x70] sm:$0xff]  ;;  %v48_v8 = vld [vmem:[%s1509_s0 + $0x18] sm:$0xff]  ;;  %v1249_v9 = vld [vmem:[%s1512_s3 + $0x68] sm:$0xff]  ;;  %vm778_vm8 = vcmask 523712   ;;  %vm785_vm9 = vcmask 589312   ;;  %vm792_vm10 = vcmask 654912  }
  0x12   :  { %963 = vmatpush3.msra.mxu0 %v62_v1  ;;  %v303_v10 = vld [vmem:[#allocation3 + $0x10] sm:$0xf]  ;;  %v1254_v11 = vld [vmem:[%s1509_s0 + $0x20] sm:$0xff]  ;;  %v302_v13 = vld [vmem:[#allocation3 + $0x8] sm:$0xff]  ;;  %vm799_vm11 = vcmask 720512   ;;  %vm806_vm12 = vcmask 786112  }
  0x13   :  { %964 = vmatprep.subr.mxu0 %v61_v3  ;;  %990 = vmatprep.subr.msk.mxu1 %vm120_vm0, %v303_v10  ;;  %v1262_v12 = vld [vmem:[%s1512_s3 + $0x60] sm:$0xff]  ;;  %v1272_v14 = vld [vmem:[%s1509_s0 + $0x28] sm:$0xff]  ;;  %v1278_v15 = vld [vmem:[%s1512_s3 + $0x58] sm:$0xff]  ;;  %vm813_vm13 = vcmask 851712   ;;  %vm820_vm14 = vcmask 917312   ;;  %vm827_vm15 = vcmask 982912  }
  0x14   :  { %965 = vmatpush3.msra.mxu0 %v61_v3  ;;  %991 = vmatpush3.msk.msra.mxu1 %vm120_vm0, %v303_v10  ;;  %v1283_v16 = vld [vmem:[%s1509_s0 + $0x30] sm:$0xff]  ;;  %v301_v18 = vld [vmem:[#allocation3] sm:$0xff]  ;;  %v52_v19 = vld [vmem:[%s1509_s0 + $0x38] sm:$0xff]  ;;  %vm834_vm0 = vcmask 1048512  }
  0x15   :  { %967 = vmatmul.mubr.msk.f32.vlgmr.msra.gmra.mxu0 %vm71_vm1, %v46_v4  ;;  %1020 = vmatprep.subr.mxu0 %v300_v6  ;;  %v1290_v17 = vld [vmem:[%s1512_s3 + $0x50] sm:$0xff]  ;;  %v294_v20 = vld [vmem:[%s1512_s3 + $0x48] sm:$0xff]  ;;  %v53_v21 = vld [vmem:[%s1509_s0 + $0x40] sm:$0xff] }
  0x16   :  { %969 = vmatprep.mubr.msk.f32.mxu0 %vm71_vm1, %v1230_v5  ;;  %1021 = vmatpush3.msra.mxu0 %v300_v6  ;;  %v293_v22 = vld [vmem:[%s1512_s3 + $0x40] sm:$0xff]  ;;  %v54_v23 = vld [vmem:[%s1509_s0 + $0x48] sm:$0xff]  ;;  %v292_v24 = vld [vmem:[%s1512_s3 + $0x38] sm:$0xff] }
  0x17   :  { %1022 = vmatprep.subr.mxu0 %v1238_v7  ;;  %992 = vmatprep.subr.mxu1 %v302_v13  ;;  %v55_v25 = vld [vmem:[%s1509_s0 + $0x50] sm:$0xff]  ;;  %v56_v27 = vld [vmem:[%s1509_s0 + $0x58] sm:$0xff]  ;;  %v57_v28 = vld [vmem:[%s1509_s0 + $0x60] sm:$0xff] }
  0x18   :  { %1023 = vmatpush3.msra.mxu0 %v1238_v7  ;;  %993 = vmatpush3.msra.mxu1 %v302_v13  ;;  %v291_v26 = vld [vmem:[%s1512_s3 + $0x30] sm:$0xff]  ;;  %v290_v29 = vld [vmem:[%s1512_s3 + $0x28] sm:$0xff]  ;;  %v289_v32 = vld [vmem:[%s1512_s3 + $0x20] sm:$0xff] }
  0x19   :  { %970 = vmatmul.mubr.msk.f32.gmra.mxu0 %vm71_vm1, %v48_v8  ;;  %1024 = vmatprep.subr.mxu0 %v1249_v9  ;;  %v58_v30 = vld [vmem:[%s1509_s0 + $0x68] sm:$0xff]  ;;  %v59_v31 = vld [vmem:[%s1509_s0 + $0x70] sm:$0xff]  ;;  %v60_v33 = vld [vmem:[%s1509_s0 + $0x78] sm:$0xff] }
  0x1a   :  { %972 = vmatprep.mubr.msk.f32.mxu0 %vm71_vm1, %v1254_v11  ;;  %1025 = vmatpush3.msra.mxu0 %v1249_v9  ;;  %v288_v34 = vld [vmem:[%s1512_s3 + $0x18] sm:$0xff]  ;;  %v287_v35 = vld [vmem:[%s1512_s3 + $0x10] sm:$0xff]  ;;  %v286_v36 = vld [vmem:[%s1512_s3 + $0x8] sm:$0xff] }
  0x1b   :  { %1026 = vmatprep.subr.mxu0 %v1262_v12  ;;  %994 = vmatprep.subr.mxu1 %v301_v18  ;;  %v285_v37 = vld [vmem:[%s1512_s3] sm:$0xff] }
  0x1c   :  { %1027 = vmatpush3.msra.mxu0 %v1262_v12  ;;  %995 = vmatpush3.msra.mxu1 %v301_v18  ;;  %v853_v38 = vld [vmem:[%s1511_s2] ss:$0 sm:$0xff] }
  0x1d   :  { %973 = vmatmul.mubr.msk.f32.gmra.mxu0 %vm71_vm1, %v1272_v14  ;;  %1028 = vmatprep.subr.mxu0 %v1278_v15 }
  0x1e   :  { %975 = vmatprep.mubr.msk.f32.mxu0 %vm71_vm1, %v1283_v16  ;;  %1029 = vmatpush3.msra.mxu0 %v1278_v15 }
  0x1f   :  { %1030 = vmatprep.subr.mxu0 %v1290_v17  ;;  %997 = vmatmul.mubr.msk.f32.vlgmr.msra.gmra.mxu1 %vm71_vm1, %v46_v4 }
  0x20   :  { %1031 = vmatpush3.msra.mxu0 %v1290_v17  ;;  %1076 = vmatprep.subr.mxu1 %v300_v6 }
  0x21   :  { %976 = vmatmul.mubr.msk.f32.gmra.mxu0 %vm71_vm1, %v52_v19  ;;  %1032 = vmatprep.subr.mxu0 %v294_v20 }
  0x22   :  { %978 = vmatprep.mubr.msk.f32.mxu0 %vm71_vm1, %v53_v21  ;;  %1033 = vmatpush3.msra.mxu0 %v294_v20 }
  0x23   :  { %1034 = vmatprep.subr.mxu0 %v293_v22  ;;  %1092 = vmatpush3.msra.mxu1 %v300_v6 }
  0x24   :  { %1035 = vmatpush3.msra.mxu0 %v293_v22  ;;  %999 = vmatprep.mubr.msk.f32.mxu1 %vm71_vm1, %v1230_v5 }
  0x25   :  { %979 = vmatmul.mubr.msk.f32.gmra.mxu0 %vm71_vm1, %v54_v23  ;;  %1036 = vmatprep.subr.mxu0 %v292_v24 }
  0x26   :  { %981 = vmatprep.mubr.msk.f32.mxu0 %vm71_vm1, %v55_v25  ;;  %1037 = vmatpush3.msra.mxu0 %v292_v24 }
  0x27   :  { %1038 = vmatprep.subr.mxu0 %v291_v26  ;;  %1077 = vmatprep.subr.mxu1 %v1238_v7 }
  0x28   :  { %1000 = vmatmul.mubr.msk.f32.gmra.mxu1 %vm71_vm1, %v48_v8  ;;  %1039 = vmatpush3.msra.mxu0 %v291_v26 }
  0x29   :  { %982 = vmatmul.mubr.msk.f32.gmra.mxu0 %vm71_vm1, %v56_v27  ;;  %1093 = vmatpush3.msra.mxu1 %v1238_v7 }
  0x2a   :  { %984 = vmatprep.mubr.msk.f32.mxu0 %vm71_vm1, %v57_v28  ;;  %1040 = vmatprep.subr.mxu0 %v290_v29 }
  0x2b   :  { %1078 = vmatprep.subr.mxu1 %v1249_v9  ;;  %1041 = vmatpush3.msra.mxu0 %v290_v29 }
  0x2c   :  { %1094 = vmatpush3.msra.mxu1 %v1249_v9  ;;  %1042 = vmatprep.subr.mxu0 %v289_v32 }
  0x2d   :  { %985 = vmatmul.mubr.msk.f32.gmra.mxu0 %vm71_vm1, %v58_v30  ;;  %1002 = vmatprep.mubr.msk.f32.mxu1 %vm71_vm1, %v1254_v11 }
  0x2e   :  { %987 = vmatprep.mubr.msk.f32.mxu0 %vm71_vm1, %v59_v31  ;;  %1079 = vmatprep.subr.mxu1 %v1262_v12 }
  0x2f   :  { %1043 = vmatpush3.msra.mxu0 %v289_v32  ;;  %1003 = vmatmul.mubr.msk.f32.gmra.mxu1 %vm71_vm1, %v1272_v14 }
  0x30   :  { %1095 = vmatpush3.msra.mxu1 %v1262_v12  ;;  %1044 = vmatprep.subr.mxu0 %v288_v34 }
  0x31   :  { %988 = vmatmul.mubr.msk.f32.gmra.mxu0 %vm71_vm1, %v60_v33  ;;  %1080 = vmatprep.subr.mxu1 %v1278_v15 }
  0x32   :  { %1045 = vmatpush3.msra.mxu0 %v288_v34  ;;  %1096 = vmatpush3.msra.mxu1 %v1278_v15 }
  0x33   :  { %1005 = vmatprep.mubr.msk.f32.mxu1 %vm71_vm1, %v1283_v16  ;;  %1081 = vmatprep.subr.mxu1 %v1290_v17 }
  0x34   :  { %1006 = vmatmul.mubr.msk.f32.gmra.mxu1 %vm71_vm1, %v52_v19  ;;  %1046 = vmatprep.subr.mxu0 %v287_v35 }
  0x35   :  { %1097 = vmatpush3.msra.mxu1 %v1290_v17  ;;  %1008 = vmatprep.mubr.msk.f32.mxu1 %vm71_vm1, %v53_v21 }
  0x36   :  { %1082 = vmatprep.subr.mxu1 %v294_v20  ;;  %1047 = vmatpush3.msra.mxu0 %v287_v35 }
  0x37   :  { %1098 = vmatpush3.msra.mxu1 %v294_v20  ;;  %1048 = vmatprep.subr.mxu0 %v286_v36 }
  0x38   :  { %1083 = vmatprep.subr.mxu1 %v293_v22  ;;  %1009 = vmatmul.mubr.msk.f32.gmra.mxu1 %vm71_vm1, %v54_v23 }
  0x39   :  { %1099 = vmatpush3.msra.mxu1 %v293_v22  ;;  %1011 = vmatprep.mubr.msk.f32.mxu1 %vm71_vm1, %v55_v25 }
  0x3a   :  { %1084 = vmatprep.subr.mxu1 %v292_v24  ;;  %1049 = vmatpush3.msra.mxu0 %v286_v36 }
  0x3b   :  { %1100 = vmatpush3.msra.mxu1 %v292_v24  ;;  %1050 = vmatprep.subr.mxu0 %v285_v37 }
  0x3c   :  { %1085 = vmatprep.subr.mxu1 %v291_v26  ;;  %1012 = vmatmul.mubr.msk.f32.gmra.mxu1 %vm71_vm1, %v56_v27 }
  0x3d   :  { %1101 = vmatpush3.msra.mxu1 %v291_v26  ;;  %1014 = vmatprep.mubr.msk.f32.mxu1 %vm71_vm1, %v57_v28 }
  0x3e   :  { %1086 = vmatprep.subr.mxu1 %v290_v29  ;;  %1051 = vmatpush3.msra.mxu0 %v285_v37 }
  0x3f   :  { %1102 = vmatpush3.msra.mxu1 %v290_v29 }
  0x40   :  { %1087 = vmatprep.subr.mxu1 %v289_v32  ;;  %1015 = vmatmul.mubr.msk.f32.gmra.mxu1 %vm71_vm1, %v58_v30 }
  0x41   :  { %1103 = vmatpush3.msra.mxu1 %v289_v32  ;;  %1017 = vmatprep.mubr.msk.f32.mxu1 %vm71_vm1, %v59_v31 }
  0x42   :  { %1088 = vmatprep.subr.mxu1 %v288_v34 }
  0x43   :  { %1104 = vmatpush3.msra.mxu1 %v288_v34 }
  0x44   :  { %1018 = vmatmul.mubr.msk.f32.gmra.mxu1 %vm71_vm1, %v60_v33  ;;  %1089 = vmatprep.subr.mxu1 %v287_v35 }
  0x45   :  { %1105 = vmatpush3.msra.mxu1 %v287_v35 }
  0x46   :  { %1090 = vmatprep.subr.mxu1 %v286_v36 }
  0x47   :  { %1106 = vmatpush3.msra.mxu1 %v286_v36  ;;  %v1403_v36 = vld [vmem:[%s1514_s5] ss:$0 sm:$0xff] }
  0x48   :  { %1091 = vmatprep.subr.mxu1 %v285_v37 }
  0x49   :  { %1107 = vmatpush3.msra.mxu1 %v285_v37 }
  0xd5   :  { %v968_v39 = vpop.f32.mrf.mxu0 }
  0xd6   :  { %v196_v40 = vadd.f32 %v968_v39, %v853_v38 }
  0xd7   :  { %v190_v41 = vpop.f32.mrf.mxu0 }
  0xd8   :  { %v191_v42 = vadd.f32 %v853_v38, %v190_v41  ;;  %v270_v45 = vmax.f32 %v196_v40, 0.0 }
  0xd9   :  { %v971_v43 = vpop.f32.mrf.mxu0 }
  0xda   :  { %v269_v44 = vmax.f32 %v191_v42, 0.0  ;;  %v206_v46 = vadd.f32 %v971_v43, %v853_v38 }
  0xdb   :  { %v200_v47 = vpop.f32.mrf.mxu0 }
  0xdc   :  { %v201_v48 = vadd.f32 %v853_v38, %v200_v47  ;;  %1052 = vmatprep.mubr.f32.mxu0 %v269_v44  ;;  %v272_v51 = vmax.f32 %v206_v46, 0.0  ;;  %v1413_v44 = vld [vmem:[%s1515_s6] ss:$0 sm:$0xff] }
  0xdd   :  { %v974_v49 = vpop.f32.mrf.mxu0  ;;  %1053 = vmatmul.mubr.f32.vlgmr.msra.gmra.mxu0 %v270_v45 }
  0xde   :  { %v271_v50 = vmax.f32 %v201_v48, 0.0  ;;  %v216_v52 = vadd.f32 %v974_v49, %v853_v38 }
  0xdf   :  { %v210_v53 = vpop.f32.mrf.mxu0  ;;  %v998_v23 = vpop.f32.mrf.mxu1 }
  0xe0   :  { %v211_v54 = vadd.f32 %v853_v38, %v210_v53  ;;  %1055 = vmatprep.mubr.f32.mxu0 %v271_v50  ;;  %v274_v57 = vmax.f32 %v216_v52, 0.0 }
  0xe1   :  { %v977_v55 = vpop.f32.mrf.mxu0  ;;  %1056 = vmatmul.mubr.f32.gmra.mxu0 %v272_v51  ;;  %v373_v24 = vpop.f32.mrf.mxu1 }
  0xe2   :  { %v273_v56 = vmax.f32 %v211_v54, 0.0  ;;  %v226_v58 = vadd.f32 %v977_v55, %v853_v38 }
  0xe3   :  { %v220_v59 = vpop.f32.mrf.mxu0 }
  0xe4   :  { %v221_v60 = vadd.f32 %v853_v38, %v220_v59  ;;  %1058 = vmatprep.mubr.f32.mxu0 %v273_v56  ;;  %v276_v63 = vmax.f32 %v226_v58, 0.0 }
  0xe5   :  { %v980_v61 = vpop.f32.mrf.mxu0  ;;  %1059 = vmatmul.mubr.f32.gmra.mxu0 %v274_v57 }
  0xe6   :  { %v275_v62 = vmax.f32 %v221_v60, 0.0  ;;  %v236_v0 = vadd.f32 %v980_v61, %v853_v38 }
  0xe7   :  { %v230_v1 = vpop.f32.mrf.mxu0 }
  0xe8   :  { %v231_v2 = vadd.f32 %v853_v38, %v230_v1  ;;  %1061 = vmatprep.mubr.f32.mxu0 %v275_v62  ;;  %v278_v5 = vmax.f32 %v236_v0, 0.0  ;;  %v1001_v25 = vpop.f32.mrf.mxu1 }
  0xe9   :  { %v983_v3 = vpop.f32.mrf.mxu0  ;;  %1062 = vmatmul.mubr.f32.gmra.mxu0 %v276_v63 }
  0xea   :  { %v277_v4 = vmax.f32 %v231_v2, 0.0  ;;  %v246_v6 = vadd.f32 %v983_v3, %v853_v38  ;;  %v383_v26 = vpop.f32.mrf.mxu1 }
  0xeb   :  { %v240_v7 = vpop.f32.mrf.mxu0 }
  0xec   :  { %v241_v8 = vadd.f32 %v853_v38, %v240_v7  ;;  %1064 = vmatprep.mubr.f32.mxu1 %v277_v4  ;;  %v280_v11 = vmax.f32 %v246_v6, 0.0 }
  0xed   :  { %v986_v9 = vpop.f32.mrf.mxu0  ;;  %1065 = vmatmul.mubr.f32.vlgmr.msra.gmra.mxu1 %v278_v5 }
  0xee   :  { %v279_v10 = vmax.f32 %v241_v8, 0.0  ;;  %v256_v12 = vadd.f32 %v986_v9, %v853_v38 }
  0xef   :  { %v250_v13 = vpop.f32.mrf.mxu0  ;;  %v1004_v27 = vpop.f32.mrf.mxu1 }
  0xf0   :  { %v251_v14 = vadd.f32 %v853_v38, %v250_v13  ;;  %1067 = vmatprep.mubr.f32.mxu1 %v279_v10  ;;  %v282_v17 = vmax.f32 %v256_v12, 0.0 }
  0xf1   :  { %v989_v15 = vpop.f32.mrf.mxu0  ;;  %1068 = vmatmul.mubr.f32.gmra.mxu1 %v280_v11  ;;  %v393_v28 = vpop.f32.mrf.mxu1 }
  0xf2   :  { %v281_v16 = vmax.f32 %v251_v14, 0.0  ;;  %v266_v18 = vadd.f32 %v989_v15, %v853_v38 }
  0xf3   :  { %v260_v19 = vpop.f32.mrf.mxu0 }
  0xf4   :  { %v261_v20 = vadd.f32 %v853_v38, %v260_v19  ;;  %1070 = vmatprep.mubr.f32.mxu1 %v281_v16  ;;  %v284_v22 = vmax.f32 %v266_v18, 0.0  ;;  %v1007_v29 = vpop.f32.mrf.mxu1 }
  0xf5   :  { %1071 = vmatmul.mubr.f32.gmra.mxu1 %v282_v17 }
  0xf6   :  { %v283_v21 = vmax.f32 %v261_v20, 0.0  ;;  %v403_v30 = vpop.f32.mrf.mxu1 }
  0xf8   :  { %1073 = vmatprep.mubr.f32.mxu1 %v283_v21  ;;  %v1010_v31 = vpop.f32.mrf.mxu1 }
  0xf9   :  { %1074 = vmatmul.mubr.f32.gmra.mxu1 %v284_v22 }
  0xfa   :  { %v413_v32 = vpop.f32.mrf.mxu1 }
  0xfc   :  { %v1013_v33 = vpop.f32.mrf.mxu1 }
  0xfe   :  { %v1398_v34 = vpop.f32.mrf.mxu1 }
 0x100   :  { %v1405_v37 = vpop.f32.mrf.mxu1 }
 0x102   :  { %v1408_v43 = vpop.f32.mrf.mxu1 }
 0x104   :  { %v1019_v54 = vpop.f32.mrf.mxu1 }
 0x106   :  { %v443_v1 = vpop.f32.mrf.mxu1 }
 0x19d   :  { %v1054_v35 = vpop.f32.mrf.mxu0 }
 0x19e   :  { %v524_v38 = vadd.f32 %v1054_v35, %v998_v23 }
 0x19f   :  { %v518_v39 = vpop.f32.mrf.mxu0 }
 0x1a0   :  { %v519_v40 = vadd.f32 %v518_v39, %v373_v24  ;;  %v605_v41 = vadd.f32 %v1403_v36, %v524_v38 }
 0x1a1   :  { %v1057_v42 = vpop.f32.mrf.mxu0 }
 0x1a2   :  { %v604_v45 = vadd.f32 %v1403_v36, %v519_v40  ;;  %v534_v46 = vadd.f32 %v1057_v42, %v1001_v25  ;;  %v621_v47 = vmax.f32 %v605_v41, 0.0 }
 0x1a3   :  { %v528_v48 = vpop.f32.mrf.mxu0 }
 0x1a4   :  { %v620_v49 = vmax.f32 %v604_v45, 0.0  ;;  %v529_v50 = vadd.f32 %v528_v48, %v383_v26  ;;  %v644_v51 = vmul.f32 %v1413_v44, %v621_v47  ;;  %v607_v52 = vadd.f32 %v1403_v36, %v534_v46 }
 0x1a5   :  { %v1060_v53 = vpop.f32.mrf.mxu0 }
 0x1a6   :  { %v606_v55 = vadd.f32 %v1403_v36, %v529_v50  ;;  %v544_v56 = vadd.f32 %v1060_v53, %v1004_v27  ;;  %661 = vadd.xlane.f32.xlu0 %v644_v51  ;;  %v623_v57 = vmax.f32 %v607_v52, 0.0  ;;  %v643_v59 = vmul.f32 %v1413_v44, %v620_v49 }
 0x1a7   :  { %v538_v58 = vpop.f32.mrf.mxu0 }
 0x1a8   :  { %v622_v60 = vmax.f32 %v606_v55, 0.0  ;;  %v609_v61 = vadd.f32 %v1403_v36, %v544_v56  ;;  %v539_v62 = vadd.f32 %v538_v58, %v393_v28  ;;  %v646_v63 = vmul.f32 %v1413_v44, %v623_v57 }
 0x1a9   :  { %v1063_v0 = vpop.f32.mrf.mxu0 }
 0x1aa   :  { %v608_v2 = vadd.f32 %v1403_v36, %v539_v62  ;;  %v554_v3 = vadd.f32 %v1063_v0, %v1007_v29  ;;  %665 = vadd.xlane.f32.xlu1 %v646_v63  ;;  %659 = vadd.xlane.f32.xlu0 %v643_v59  ;;  %v625_v4 = vmax.f32 %v609_v61, 0.0  ;;  %v645_v9 = vmul.f32 %v1413_v44, %v622_v60 }
 0x1ab   :  { %v548_v5 = vpop.f32.mrf.mxu0  ;;  %v725_v59 = vlaneseq  ;;  %v1457_v63 = vstv %s1516_s7  ;;  %s1159_s7 = smov [#allocation6]  }
 0x1ac   :  { %v624_v6 = vmax.f32 %v608_v2, 0.0  ;;  %v611_v7 = vadd.f32 %v1403_v36, %v554_v3  ;;  %v549_v8 = vadd.f32 %v548_v5, %v403_v30  ;;  %v648_v19 = vmul.f32 %v1413_v44, %v625_v4  ;;  %s844_s13 = sshll.u32 %s1159_s7, 4  ;;  %s845_s13 = int_to_ptr.vmem [resolvable:$true] %s844_s13 }
 0x1ad   :  { %v1066_v10 = vpop.f32.mrf.mxu1  ;;  %v1449_v60 = vand.u32 127, %v725_v59  ;;  %s1132_s14 = scalar_lea.vmem %s845_s13, 16  ;;  %s1136_s15 = scalar_lea.vmem %s845_s13, 32 }
 0x1ae   :  { %v610_v11 = vadd.f32 %v1403_v36, %v549_v8  ;;  %v564_v12 = vadd.f32 %v1066_v10, %v1010_v31  ;;  %663 = vadd.xlane.f32.xlu1 %v645_v9  ;;  %v647_v13 = vmul.f32 %v1413_v44, %v624_v6  ;;  %v627_v14 = vmax.f32 %v611_v7, 0.0  ;;  %p1133_p5 = scmp.ne.s32.totalorder %s845_s13, %s1132_s14  ;;  %p1137_p6 = scmp.lt.s32.totalorder %s845_s13, %s845_s13 }
 0x1af   :  { %v558_v15 = vpop.f32.mrf.mxu1  ;;  %v731_v62 = vadd.s32 4294967288, %v1449_v60  ;;  %v738_v0 = vadd.s32 4294967280, %v1449_v60  ;;  %v752_v5 = vadd.s32 4294967264, %v1449_v60  ;;  %v759_v9 = vadd.s32 4294967256, %v1449_v60  ;;  %p1138_p7 = scmp.lt.s32.totalorder %s1136_s15, %s1132_s14 }
 0x1b0   :  { %v626_v16 = vmax.f32 %v610_v11, 0.0  ;;  %v613_v17 = vadd.f32 %v1403_v36, %v564_v12  ;;  %v559_v18 = vadd.f32 %v558_v15, %v413_v32  ;;  %667 = vadd.xlane.f32.xlu0 %v647_v13  ;;  %v650_v25 = vmul.f32 %v1413_v44, %v627_v14 }
 0x1b1   :  { %v1069_v20 = vpop.f32.mrf.mxu1  ;;  %p1139_p8 = por %p1138_p7, %p1137_p6 }
 0x1b2   :  { %v612_v21 = vadd.f32 %v1403_v36, %v559_v18  ;;  %v574_v22 = vadd.f32 %v1069_v20, %v1013_v33  ;;  %669 = vadd.xlane.f32.xlu1 %v648_v19  ;;  %v649_v23 = vmul.f32 %v1413_v44, %v626_v16  ;;  %v629_v26 = vmax.f32 %v613_v17, 0.0 }
 0x1b3   :  { %v568_v24 = vpop.f32.mrf.mxu1  ;;  %v766_v16 = vadd.s32 4294967248, %v1449_v60  ;;  %p1140_p9 = pnand %p1139_p8, %p1133_p5 }
 0x1b4   :  { %v628_v27 = vmax.f32 %v612_v21, 0.0  ;;  %v615_v28 = vadd.f32 %v1403_v36, %v574_v22  ;;  %v569_v29 = vadd.f32 %v568_v24, %v1398_v34  ;;  %671 = vadd.xlane.f32.xlu0 %v649_v23  ;;  %v652_v42 = vmul.f32 %v1413_v44, %v629_v26 }
 0x1b5   :  { %v1072_v30 = vpop.f32.mrf.mxu1  ;;  %v773_v22 = vadd.s32 4294967240, %v1449_v60  ;;  %v780_v26 = vadd.s32 4294967232, %v1449_v60 }
 0x1b6   :  { %v614_v31 = vadd.f32 %v1403_v36, %v569_v29  ;;  %v584_v32 = vadd.f32 %v1072_v30, %v1405_v37  ;;  %673 = vadd.xlane.f32.xlu1 %v650_v25  ;;  %v651_v33 = vmul.f32 %v1413_v44, %v628_v27  ;;  %v631_v35 = vmax.f32 %v615_v28, 0.0 }
 0x1b7   :  { %v578_v38 = vpop.f32.mrf.mxu1 }
 0x1b8   :  { %v630_v39 = vmax.f32 %v614_v31, 0.0  ;;  %v617_v40 = vadd.f32 %v1403_v36, %v584_v32  ;;  %v579_v41 = vadd.f32 %v578_v38, %v1408_v43  ;;  %675 = vadd.xlane.f32.xlu0 %v651_v33  ;;  %v654_v48 = vmul.f32 %v1413_v44, %v631_v35 }
 0x1b9   :  { %v1075_v34 = vpop.f32.mrf.mxu1  ;;  %v787_v33 = vadd.s32 4294967224, %v1449_v60 }
 0x1ba   :  { %v616_v45 = vadd.f32 %v1403_v36, %v579_v41  ;;  %v594_v46 = vadd.f32 %v1075_v34, %v1019_v54  ;;  %677 = vadd.xlane.f32.xlu1 %v652_v42  ;;  %v653_v37 = vmul.f32 %v1413_v44, %v630_v39  ;;  %v633_v49 = vmax.f32 %v617_v40, 0.0 }
 0x1bb   :  { %v588_v47 = vpop.f32.mrf.mxu1 }
 0x1bc   :  { %v632_v50 = vmax.f32 %v616_v45, 0.0  ;;  %v619_v51 = vadd.f32 %v1403_v36, %v594_v46  ;;  %v589_v52 = vadd.f32 %v588_v47, %v443_v1  ;;  %679 = vadd.xlane.f32.xlu0 %v653_v37  ;;  %v656_v54 = vmul.f32 %v1413_v44, %v633_v49 }
 0x1bd   :  { %v745_v1 = vadd.s32 4294967272, %v1449_v60  ;;  %v794_v37 = vadd.s32 4294967216, %v1449_v60 }
 0x1be   :  { %v618_v43 = vadd.f32 %v1403_v36, %v589_v52  ;;  %681 = vadd.xlane.f32.xlu1 %v654_v48  ;;  %v655_v53 = vmul.f32 %v1413_v44, %v632_v50  ;;  %v635_v55 = vmax.f32 %v619_v51, 0.0  ;;  %v1451_v36 = vshrl.u32 %v725_v59, 7 }
 0x1bf   :  { %v801_v52 = vadd.s32 4294967208, %v1449_v60  ;;  %v815_v59 = vadd.s32 4294967192, %v1449_v60 }
 0x1c0   :  { %v634_v56 = vmax.f32 %v618_v43, 0.0  ;;  %683 = vadd.xlane.f32.xlu0 %v655_v53  ;;  %v658_v58 = vmul.f32 %v1413_v44, %v635_v55  ;;  %v734_v6 = vsub.s32 %v731_v62, %v1451_v36  ;;  %v741_v8 = vsub.s32 %v738_v0, %v1451_v36 }
 0x1c1   :  { %v748_v10 = vsub.s32 %v745_v1, %v1451_v36  ;;  %v755_v15 = vsub.s32 %v752_v5, %v1451_v36  ;;  %v762_v21 = vsub.s32 %v759_v9, %v1451_v36  ;;  %v769_v30 = vsub.s32 %v766_v16, %v1451_v36 }
 0x1c2   :  { %685 = vadd.xlane.f32.xlu1 %v656_v54  ;;  %v657_v57 = vmul.f32 %v1413_v44, %v634_v56  ;;  %v729_v44 = vsub.s32 %v1449_v60, %v1451_v36  ;;  %v776_v40 = vsub.s32 %v773_v22, %v1451_v36  ;;  %v783_v42 = vsub.s32 %v780_v26, %v1451_v36 }
 0x1c3   :  { %v790_v48 = vsub.s32 %v787_v33, %v1451_v36  ;;  %v808_v53 = vadd.s32 4294967200, %v1449_v60  ;;  %v804_v1 = vsub.s32 %v801_v52, %v1451_v36 }
 0x1c4   :  { %687 = vadd.xlane.f32.xlu0 %v657_v57  ;;  %v797_v57 = vsub.s32 %v794_v37, %v1451_v36 }
 0x1c6   :  { %689 = vadd.xlane.f32.xlu1 %v658_v58 }
 0x22f   :  { %v662_v61 = vpop.xlane.xlu0 %661 }
 0x230   :  { %v694_v7 = vadd.f32 %v1457_v63, %v662_v61 }
 0x232   :  { %v735_v17 = vrot.slane %v694_v7, %v734_v6  ;;  %v822_v6 = vadd.s32 4294967184, %v1449_v60 }
 0x233   :  { %v666_v2 = vpop.xlane.xlu1 %665  ;;  %v660_v3 = vpop.xlane.xlu0 %659 }
 0x234   :  { %v693_v4 = vadd.f32 %v1457_v63, %v660_v3  ;;  %v696_v11 = vadd.f32 %v1457_v63, %v666_v2 }
 0x236   :  { %v730_v12 = vrot.slane %v693_v4, %v729_v44  ;;  %v749_v23 = vrot.slane %v696_v11, %v748_v10  ;;  %v811_v44 = vsub.s32 %v808_v53, %v1451_v36 }
 0x237   :  { %v664_v13 = vpop.xlane.xlu1 %663 }
 0x238   :  { %v695_v14 = vadd.f32 %v1457_v63, %v664_v13  ;;  %v737_v24 = vsel %vm736_vm2, %v735_v17, %v730_v12  ;;  %v829_v12 = vadd.s32 4294967176, %v1449_v60  ;;  %v825_v17 = vsub.s32 %v822_v6, %v1451_v36 }
 0x239   :  { %v668_v18 = vpop.xlane.xlu0 %667 }
 0x23a   :  { %v742_v19 = vrot.slane %v695_v14, %v741_v8  ;;  %v697_v20 = vadd.f32 %v1457_v63, %v668_v18  ;;  %v818_v8 = vsub.s32 %v815_v59, %v1451_v36  ;;  %v832_v22 = vsub.s32 %v829_v12, %v1451_v36 }
 0x23b   :  { %v670_v25 = vpop.xlane.xlu1 %669 }
 0x23c   :  { %v744_v27 = vsel %vm743_vm3, %v742_v19, %v737_v24  ;;  %v756_v28 = vrot.slane %v697_v20, %v755_v15  ;;  %v698_v29 = vadd.f32 %v1457_v63, %v670_v25 }
 0x23d   :  { %v751_v31 = vsel %vm750_vm4, %v749_v23, %v744_v27  ;;  %v672_v32 = vpop.xlane.xlu0 %671 }
 0x23e   :  { %v758_v35 = vsel %vm757_vm5, %v756_v28, %v751_v31  ;;  %v763_v38 = vrot.slane %v698_v29, %v762_v21  ;;  %v699_v39 = vadd.f32 %v1457_v63, %v672_v32 }
 0x23f   :  { %v674_v41 = vpop.xlane.xlu1 %673 }
 0x240   :  { %v765_v34 = vsel %vm764_vm6, %v763_v38, %v758_v35  ;;  %v770_v45 = vrot.slane %v699_v39, %v769_v30  ;;  %v700_v46 = vadd.f32 %v1457_v63, %v674_v41 }
 0x241   :  { %v676_v47 = vpop.xlane.xlu0 %675 }
 0x242   :  { %v772_v49 = vsel %vm771_vm7, %v770_v45, %v765_v34  ;;  %v777_v50 = vrot.slane %v700_v46, %v776_v40  ;;  %v701_v51 = vadd.f32 %v1457_v63, %v676_v47 }
 0x243   :  { %v678_v43 = vpop.xlane.xlu1 %677 }
 0x244   :  { %v779_v55 = vsel %vm778_vm8, %v777_v50, %v772_v49  ;;  %v784_v56 = vrot.slane %v701_v51, %v783_v42  ;;  %v702_v54 = vadd.f32 %v1457_v63, %v678_v43 }
 0x245   :  { %v680_v58 = vpop.xlane.xlu0 %679 }
 0x246   :  { %v786_v61 = vsel %vm785_vm9, %v784_v56, %v779_v55  ;;  %v791_v62 = vrot.slane %v702_v54, %v790_v48  ;;  %v703_v0 = vadd.f32 %v1457_v63, %v680_v58 }
 0x247   :  { %v682_v2 = vpop.xlane.xlu1 %681 }
 0x248   :  { %v793_v3 = vsel %vm792_vm10, %v791_v62, %v786_v61  ;;  %v798_v4 = vrot.slane %v703_v0, %v797_v57  ;;  %v704_v5 = vadd.f32 %v1457_v63, %v682_v2 }
 0x249   :  { %v684_v7 = vpop.xlane.xlu0 %683 }
 0x24a   :  { %v800_v9 = vsel %vm799_vm11, %v798_v4, %v793_v3  ;;  %v805_v10 = vrot.slane %v704_v5, %v804_v1  ;;  %v705_v11 = vadd.f32 %v1457_v63, %v684_v7 }
 0x24b   :  { %v686_v13 = vpop.xlane.xlu1 %685 }
 0x24c   :  { %v807_v14 = vsel %vm806_vm12, %v805_v10, %v800_v9  ;;  %v812_v15 = vrot.slane %v705_v11, %v811_v44  ;;  %v706_v16 = vadd.f32 %v1457_v63, %v686_v13 }
 0x24d   :  { %v688_v18 = vpop.xlane.xlu0 %687 }
 0x24e   :  { %v814_v19 = vsel %vm813_vm13, %v812_v15, %v807_v14  ;;  %v819_v20 = vrot.slane %v706_v16, %v818_v8  ;;  %v707_v21 = vadd.f32 %v1457_v63, %v688_v18 }
 0x24f   :  { %v690_v23 = vpop.xlane.xlu1 %689 }
 0x250   :  { %v821_v24 = vsel %vm820_vm14, %v819_v20, %v814_v19  ;;  %v826_v60 = vrot.slane %v707_v21, %v825_v17  ;;  %v708_v25 = vadd.f32 %v1457_v63, %v690_v23 }
 0x252   :  { %v833_v26 = vrot.slane %v708_v25, %v832_v22  ;;  %v828_v27 = vsel %vm827_vm15, %v826_v60, %v821_v24 }
 0x254   :  { %v835_v28 = vsel %vm834_vm0, %v833_v26, %v828_v27 }
 0x255   :  { %837 = vst [vmem:[#allocation6] sm:$0x1] %v835_v28 }
 0x256   :  { %1143 = shalt.err (!%p1140_p9)
}
 0x257   :  { %847 = dma.vmem_to_hbm [thread:$0]  %s845_s13, 16, %s1517_s8, [#allocation5]  }
 0x258   :  { %1154 = dma.done.wait [#allocation5], 16  }
 0x259   :  { %1155 = vsyncadd [#allocation5], 4294967280 }
 0x25a   :  { %851 = vsyncpa [#allocation4], 1 }
 0x25b   :  { %852 = vsyncpa [#allocation5], 1 }

</bundles_post_ra>
